<compile_context>
chip_gen: v7x
topology: tpu7x:2x2x1
jax: 0.10.0
libtpu: 0.0.40
codegen_flags: <defaults>
</compile_context>

<pallas_src>
import functools

import jax
import jax.numpy as jnp
from jax.experimental import pallas as pl
from jax.experimental.pallas import tpu as pltpu


NEG_BIG = -1e10  # same constant the PyTorch module uses for masked_fill_


def attention_flow_kernel(ctx_ref, qry_ref, cmask_ref, qside_ref,
                          wsim_ref, wmerge_ref, bmerge_ref, out_ref,
                          *, augment, approx_recip):
    f32 = jnp.float32
    cd = wmerge_ref.dtype                 # MXU compute dtype (bf16 or f32)

    c = ctx_ref[...]                      # (Bb, T, D2) compute dtype
    q = qry_ref[...]                      # (Bb, J, D2) compute dtype
    cmask = cmask_ref[...]                # (Bb, T, 1) f32, 1.0 == padded ctx pos
    w = wsim_ref[...]                     # (3, D2) f32, rows = [w_c, w_q, w_cq]

    Bb, T, D2 = c.shape
    J = q.shape[1]
    BT = Bb * T

    wc, wq, wcq = w[0:1, :], w[1:2, :], w[2:3, :]

    # Rank-1 similarity term for the context + folded -1e10 context-mask bias
    # (bf16 activations promote against the f32 weight row -> f32 math).
    s_c = jnp.sum(c * wc, axis=-1, keepdims=True)            # (Bb, T, 1) f32
    c_bias = s_c + f32(NEG_BIG) * cmask                      # (Bb, T, 1) f32

    a_main = (c * wcq).astype(cd)                            # (Bb, T, D2)
    q_cd = q.astype(cd)

    # --- tri-linear similarity: S[b,t,j] = wc.c_t + wq.q_j + wcq.(c_t*q_j) ---
    # with the -1e10 masks applied additively (equivalent to masked_fill_ for
    # the final output except the degenerate fully-padded-query case).
    if augment:
        # Ride the rank-1 terms + mask biases on two extra MXU K columns: free
        # while D2 is not already a multiple of an MXU K pass, and it removes
        # two broadcast adds over the full (Bb,T,J) score tensor.
        s_q = jnp.sum(q * wq, axis=-1, keepdims=True)        # (Bb, J, 1) f32
        q_bias = s_q + f32(NEG_BIG) * qside_ref[...]         # qside == qmask (Bb,J,1)
        a_aug = jnp.concatenate(
            [a_main, c_bias.astype(cd), jnp.ones((Bb, T, 1), cd)], axis=-1)
        b_aug = jnp.concatenate(
            [q_cd, jnp.ones((Bb, J, 1), cd), q_bias.astype(cd)], axis=-1)
        s = jnp.einsum('btk,bjk->btj', a_aug, b_aug,
                       preferred_element_type=f32)           # (Bb, T, J) f32
    else:
        # D2 sits exactly on an MXU K-pass boundary: augmenting would add a
        # whole extra K pass, so add the rank-1/bias terms on the VPU instead.
        # qside == wrapper-precomputed row bias  q.w_q + NEG_BIG*qmask  (Bb,1,J).
        s = jnp.einsum('btk,bjk->btj', a_main, q_cd,
                       preferred_element_type=f32)
        s = s + c_bias + qside_ref[...]

    def _normalize(x, denom):
        if approx_recip:
            return x * pl.reciprocal(denom, approx=True)     # EUP slot (free-ish)
        return x / denom

    # --- c2q attention: softmax over J, weighted sum of query rows -----------
    s_max = jnp.max(s, axis=-1, keepdims=True)               # (Bb, T, 1)
    p = jnp.exp(s - s_max)
    p = _normalize(p, jnp.sum(p, axis=-1, keepdims=True))    # (Bb, T, J)
    c2q = jnp.einsum('btj,bjd->btd', p.astype(cd), q_cd,
                     preferred_element_type=f32)             # (Bb, T, D2) f32

    # --- q2c attention: max over J, softmax over T, weighted sum of context --
    e = jnp.exp(s_max - jnp.max(s_max, axis=1, keepdims=True))   # (Bb, T, 1)
    beta = _normalize(e, jnp.sum(e, axis=1, keepdims=True))      # (Bb, T, 1)
    q2c = jnp.sum(beta * c, axis=1, keepdims=True)               # (Bb, 1, D2) f32

    # --- merge: [c, c2q, c*c2q, c*q2c] with padded context rows zeroed, ------
    # --- then Linear + ReLU, as four K-aligned matmuls (no VMEM scratch). ----
    keep = 1.0 - cmask                                       # (Bb, T, 1) f32
    c_f = c * keep                                           # (Bb, T, D2) f32
    chunks = (c_f, c2q * keep, c_f * c2q, c_f * q2c)
    merged = bmerge_ref[...]                                 # (1, D2) f32
    for k, chunk in enumerate(chunks):                       # static unroll (4)
        merged = merged + jnp.dot(chunk.reshape(BT, D2).astype(cd),
                                  wmerge_ref[k],
                                  preferred_element_type=f32)    # (BT, D2) f32
    out_ref[...] = (jnp.maximum(merged, 0.0)
                    .reshape(out_ref.shape).astype(out_ref.dtype))


def _physical_vmem_bytes():
    """Per-core physical VMEM (64 MiB v7x, 128 MiB v5e/v6e); conservative fallback."""
    try:
        cap = int(pltpu.get_tpu_info().vmem_capacity_bytes)
        if cap > 0:
            return cap
    except Exception:
        pass
    return 64 * 1024 * 1024


def _choose_batch_block(B, T, J, D2, itemsize, budget_bytes):
    """Largest batch block fitting a VMEM budget (incl. 2x double-buffering)
    that still gives the grid enough depth to pipeline DMAs and feed both
    v7x TensorCores."""
    f4 = 4
    fixed = 2 * (4 * D2 * D2 * itemsize + 4 * D2 * f4) + (1 << 20)   # weights + slack
    per = (2 * T * D2 * itemsize            # context block (double-buffered)
           + 2 * J * D2 * itemsize          # query block   (double-buffered)
           + 2 * (T + J) * 128 * f4         # masks (trailing dim pads to 128 lanes)
           + 2 * T * D2 * f4                # f32 output block (double-buffered)
           + 3 * T * J * f4                 # scores + softmax temporaries
           + (T + J) * (D2 + 2) * itemsize  # augmented matmul operands
           + 4 * T * D2 * itemsize          # merge-matmul operand chunks
           + 2 * T * D2 * f4)               # c2q / masked-context f32 temps
    cap = max(1, (budget_bytes - fixed) // per)
    divisors = [d for d in range(1, B + 1) if B % d == 0 and d <= cap] or [1]
    # >= 8 grid steps (>= 4 per v7x TensorCore) with healthy (>= 512-row) blocks.
    deep = [d for d in divisors if B // d >= 8 and d * T >= 512]
    if deep:
        return max(deep)
    # Otherwise at least 2 steps (megacore + some pipelining), biggest block.
    twop = [d for d in divisors if B // d >= 2]
    if twop:
        return max(twop)
    return max(divisors)


def attention_flow(context_info, context_mask, query_info, query_mask,
                   w_sim, w_merge, b_merge, *,
                   compute_dtype=jnp.bfloat16, batch_block=None):
    """BiDAF attention-flow forward (eval mode: dropout == identity).

    context_info: (B, T, D2)    query_info: (B, J, D2)
    context_mask: (B, T) bool   query_mask: (B, J) bool   (True == padded)
    w_sim:   (3*D2,)  flat Linear(6d, 1, bias=False) weight, order [w_c; w_q; w_cq]
    w_merge: (4*D2, D2) merge weight laid out (in_features, out_features)
    b_merge: (D2,)

    # TODO(synk): for a fully padded query row the additive -1e10 bias differs
    # from torch masked_fill_ (which yields a uniform softmax); non-degenerate
    # rows match.
    """
    f32 = jnp.float32
    cd = jnp.dtype(compute_dtype)
    B, T, D2 = context_info.shape
    J = query_info.shape[1]

    vmem_phys = _physical_vmem_bytes()
    if batch_block is None:
        Bb = _choose_batch_block(B, T, J, D2, cd.itemsize,
                                 budget_bytes=int(0.55 * vmem_phys))
    else:
        Bb = int(batch_block)
    assert B % Bb == 0, f"batch_block={Bb} must divide batch={B}"

    # Activations travel at MXU precision (bf16 halves the dominant HBM reads).
    ctx = context_info.astype(cd)
    qry = query_info.astype(cd)
    cmask = context_mask.astype(f32).reshape(B, T, 1)
    w_sim3 = w_sim.reshape(3, D2).astype(f32)
    w_merge4 = w_merge.reshape(4, D2, D2).astype(cd)      # four K-aligned blocks
    b_merge2 = b_merge.reshape(1, D2).astype(f32)

    # Skip the 2-column K augmentation when D2 is already a multiple of an MXU
    # K pass (128 on v5e; also covers 256 on v6e/v7x).
    augment = (D2 % 128) != 0
    if augment:
        q_side = query_mask.astype(f32).reshape(B, J, 1)          # raw query mask
        q_side_spec = pl.BlockSpec((Bb, J, 1), lambda b: (b, 0, 0))
    else:
        # Precompute the q-side rank-1 term + mask bias in lane (row) layout so
        # the kernel adds it directly (tiny: query is the small operand).
        wq = w_sim3[1]
        q_side = (query_info.astype(f32) @ wq
                  + NEG_BIG * query_mask.astype(f32)).reshape(B, 1, J)
        q_side_spec = pl.BlockSpec((Bb, 1, J), lambda b: (b, 0, 0))

    approx_recip = cd != jnp.dtype(jnp.float32)
    kernel = functools.partial(attention_flow_kernel,
                               augment=augment, approx_recip=approx_recip)

    return pl.pallas_call(
        kernel,
        out_shape=jax.ShapeDtypeStruct((B, T, D2), f32),
        grid=(B // Bb,),
        in_specs=[
            pl.BlockSpec((Bb, T, D2), lambda b: (b, 0, 0)),   # context
            pl.BlockSpec((Bb, J, D2), lambda b: (b, 0, 0)),   # query
            pl.BlockSpec((Bb, T, 1), lambda b: (b, 0, 0)),    # context mask
            q_side_spec,                                      # query mask / row bias
            pl.BlockSpec((3, D2), lambda b: (0, 0)),          # similarity weight
            pl.BlockSpec((4, D2, D2), lambda b: (0, 0, 0)),   # merge weight blocks
            pl.BlockSpec((1, D2), lambda b: (0, 0)),          # merge bias
        ],
        out_specs=pl.BlockSpec((Bb, T, D2), lambda b: (b, 0, 0)),
        compiler_params=pltpu.CompilerParams(
            dimension_semantics=("parallel",),
            vmem_limit_bytes=int(0.75 * vmem_phys)),
    )(ctx, qry, cmask, q_side, w_sim3, w_merge4, b_merge2)


def reference(ctx, cmask, q, qmask, w_sim, w_merge, b_merge):
    """Pure-JAX f32 reference mirroring the PyTorch forward (eval mode)."""
    B, T, D2 = ctx.shape
    wc, wq, wcq = w_sim[:D2], w_sim[D2:2 * D2], w_sim[2 * D2:]
    s = (ctx @ wc)[:, :, None] + (q @ wq)[:, None, :] \
        + jnp.einsum('btd,bjd->btj', ctx * wcq, q)
    attn_mask = cmask[:, :, None] | qmask[:, None, :]
    s = jnp.where(attn_mask, NEG_BIG, s)
    p = jax.nn.softmax(s, axis=-1)
    c2q = jnp.einsum('btj,bjd->btd', p, q)
    beta = jax.nn.softmax(jnp.max(s, axis=2), axis=1)
    q2c = jnp.einsum('bt,btd->bd', beta, ctx)[:, None, :]
    q2c = jnp.broadcast_to(q2c, ctx.shape)
    result = jnp.concatenate([ctx, c2q, ctx * c2q, ctx * q2c], axis=2)
    result = jnp.where(cmask[:, :, None], 0.0, result)
    return jnp.maximum(result @ w_merge + b_merge, 0.0)


if __name__ == "__main__":
    base_key = jax.random.PRNGKey(0)

    def make_case(seed, B, T, J, D2):
        k1, k2, k3, k4, k5 = jax.random.split(jax.random.fold_in(base_key, seed), 5)
        ctx = jax.random.normal(k1, (B, T, D2), dtype=jnp.float32)
        qry = jax.random.normal(k2, (B, J, D2), dtype=jnp.float32)
        ctx_lens = jnp.maximum(jnp.array([T, T - 4])[:B], 1)
        qry_lens = jnp.maximum(jnp.array([J, J - 2])[:B], 1)
        cmask = jnp.arange(T)[None, :] >= ctx_lens[:, None]   # True == padded
        qmask = jnp.arange(J)[None, :] >= qry_lens[:, None]
        w_sim = 0.1 * jax.random.normal(k3, (3 * D2,), dtype=jnp.float32)
        w_merge = 0.1 * jax.random.normal(k4, (4 * D2, D2), dtype=jnp.float32)
        b_merge = 0.1 * jax.random.normal(k5, (D2,), dtype=jnp.float32)
        return (ctx, cmask, qry, qmask, w_sim, w_merge, b_merge)

    # Case 1: model_dim=16 -> D2=32 (augmented-K path, default production case).
    B, T, J, d = 2, 16, 8, 16
    args1 = make_case(0, B, T, J, 2 * d)
    ref1 = reference(*args1)

    out_f32 = jax.block_until_ready(
        attention_flow(*args1, compute_dtype=jnp.float32))
    assert out_f32.shape == ref1.shape
    err = float(jnp.max(jnp.abs(out_f32 - ref1)))
    assert jnp.allclose(out_f32, ref1, atol=3e-4, rtol=3e-4), \
        f"f32 max abs err {err}"

    out_bf16 = jax.block_until_ready(attention_flow(*args1))   # bf16 default
    err_bf = float(jnp.max(jnp.abs(out_bf16 - ref1)))
    assert jnp.allclose(out_bf16, ref1, atol=1e-1, rtol=1e-1), \
        f"bf16 max abs err {err_bf}"

    # Case 2: model_dim=64 -> D2=128 (MXU K-pass boundary): exercises the
    # non-augmented guard path with the wrapper-precomputed q-side row bias.
    args2 = make_case(1, 2, 16, 8, 128)
    ref2 = reference(*args2)
    out2 = jax.block_until_ready(
        attention_flow(*args2, compute_dtype=jnp.float32))
    err2 = float(jnp.max(jnp.abs(out2 - ref2)))
    assert jnp.allclose(out2, ref2, atol=1e-3, rtol=1e-3), \
        f"boundary f32 max abs err {err2}"

    print("KERNEL_OK")
</pallas_src>

<mosaic_0001>
module attributes {stable_mosaic.version = 11 : i64} {
  func.func @attention_flow_kernel(%arg0: i32, %arg1: memref<1x16x32xf32, #tpu.memory_space<vmem>>, %arg2: memref<1x8x32xf32, #tpu.memory_space<vmem>>, %arg3: memref<1x16x1xf32, #tpu.memory_space<vmem>>, %arg4: memref<1x8x1xf32, #tpu.memory_space<vmem>>, %arg5: memref<3x32xf32, #tpu.memory_space<vmem>>, %arg6: memref<4x32x32xf32, #tpu.memory_space<vmem>>, %arg7: memref<1x32xf32, #tpu.memory_space<vmem>>, %arg8: memref<1x16x32xf32, #tpu.memory_space<vmem>>) attributes {dimension_semantics = [#tpu.dimension_semantics<parallel>], iteration_bounds = array<i64: 2>, scalar_prefetch = 0 : i64, scratch_operands = 0 : i64, tpu.core_type = #tpu.core_type<tc>, window_params = [{transform_indices = @transform_0, window_bounds = array<i64: 1, 16, 32>}, {transform_indices = @transform_1, window_bounds = array<i64: 1, 8, 32>}, {transform_indices = @transform_2, window_bounds = array<i64: 1, 16, 1>}, {transform_indices = @transform_3, window_bounds = array<i64: 1, 8, 1>}, {pipeline_mode = #tpu.pipeline_mode<synchronous>, transform_indices = @transform_4, window_bounds = array<i64: 3, 32>}, {pipeline_mode = #tpu.pipeline_mode<synchronous>, transform_indices = @transform_5, window_bounds = array<i64: 4, 32, 32>}, {pipeline_mode = #tpu.pipeline_mode<synchronous>, transform_indices = @transform_6, window_bounds = array<i64: 1, 32>}, {transform_indices = @transform_7, window_bounds = array<i64: 1, 16, 32>}]} {
    %c0 = arith.constant 0 : index
    %c0_0 = arith.constant 0 : index
    %c0_1 = arith.constant 0 : index
    %0 = vector.load %arg1[%c0, %c0_0, %c0_1] : memref<1x16x32xf32, #tpu.memory_space<vmem>>, vector<1x16x32xf32>
    %c0_2 = arith.constant 0 : index
    %c0_3 = arith.constant 0 : index
    %c0_4 = arith.constant 0 : index
    %1 = vector.load %arg2[%c0_2, %c0_3, %c0_4] : memref<1x8x32xf32, #tpu.memory_space<vmem>>, vector<1x8x32xf32>
    %c0_5 = arith.constant 0 : index
    %c0_6 = arith.constant 0 : index
    %c0_7 = arith.constant 0 : index
    %2 = vector.load %arg3[%c0_5, %c0_6, %c0_7] : memref<1x16x1xf32, #tpu.memory_space<vmem>>, vector<1x16x1xf32>
    %c0_8 = arith.constant 0 : index
    %c0_9 = arith.constant 0 : index
    %3 = vector.load %arg5[%c0_8, %c0_9] : memref<3x32xf32, #tpu.memory_space<vmem>>, vector<3x32xf32>
    %4 = vector.extract_strided_slice %3 {offsets = [0, 0], sizes = [1, 32], strides = [1, 1]} : vector<3x32xf32> to vector<1x32xf32>
    %5 = vector.extract_strided_slice %3 {offsets = [1, 0], sizes = [1, 32], strides = [1, 1]} : vector<3x32xf32> to vector<1x32xf32>
    %6 = vector.extract_strided_slice %3 {offsets = [2, 0], sizes = [1, 32], strides = [1, 1]} : vector<3x32xf32> to vector<1x32xf32>
    %7 = vector.shape_cast %4 : vector<1x32xf32> to vector<1x1x32xf32>
    %8 = vector.broadcast %7 : vector<1x1x32xf32> to vector<1x16x32xf32>
    %9 = arith.mulf %0, %8 : vector<1x16x32xf32>
    %cst = arith.constant dense<0.000000e+00> : vector<1x16xf32>
    %10 = vector.multi_reduction <add>, %9, %cst [2] : vector<1x16x32xf32> to vector<1x16xf32>
    %11 = vector.shape_cast %10 : vector<1x16xf32> to vector<1x16x1xf32>
    %cst_10 = arith.constant -1.000000e+10 : f32
    %12 = vector.broadcast %cst_10 : f32 to vector<1x16x1xf32>
    %13 = arith.mulf %12, %2 : vector<1x16x1xf32>
    %14 = arith.addf %11, %13 : vector<1x16x1xf32>
    %15 = vector.shape_cast %6 : vector<1x32xf32> to vector<1x1x32xf32>
    %16 = vector.broadcast %15 : vector<1x1x32xf32> to vector<1x16x32xf32>
    %17 = arith.mulf %0, %16 : vector<1x16x32xf32>
    %18 = vector.shape_cast %5 : vector<1x32xf32> to vector<1x1x32xf32>
    %19 = vector.broadcast %18 : vector<1x1x32xf32> to vector<1x8x32xf32>
    %20 = arith.mulf %1, %19 : vector<1x8x32xf32>
    %cst_11 = arith.constant dense<0.000000e+00> : vector<1x8xf32>
    %21 = vector.multi_reduction <add>, %20, %cst_11 [2] : vector<1x8x32xf32> to vector<1x8xf32>
    %22 = vector.shape_cast %21 : vector<1x8xf32> to vector<1x8x1xf32>
    %c0_12 = arith.constant 0 : index
    %c0_13 = arith.constant 0 : index
    %c0_14 = arith.constant 0 : index
    %23 = vector.load %arg4[%c0_12, %c0_13, %c0_14] : memref<1x8x1xf32, #tpu.memory_space<vmem>>, vector<1x8x1xf32>
    %cst_15 = arith.constant -1.000000e+10 : f32
    %24 = vector.broadcast %cst_15 : f32 to vector<1x8x1xf32>
    %25 = arith.mulf %24, %23 : vector<1x8x1xf32>
    %26 = arith.addf %22, %25 : vector<1x8x1xf32>
    %cst_16 = arith.constant 1.000000e+00 : f32
    %27 = vector.broadcast %cst_16 : f32 to vector<1x16x1xf32>
    %28 = tpu.concatenate %17, %14, %27 in 2 : vector<1x16x32xf32>, vector<1x16x1xf32>, vector<1x16x1xf32> -> vector<1x16x34xf32>
    %cst_17 = arith.constant 1.000000e+00 : f32
    %29 = vector.broadcast %cst_17 : f32 to vector<1x8x1xf32>
    %30 = tpu.concatenate %1, %29, %26 in 2 : vector<1x8x32xf32>, vector<1x8x1xf32>, vector<1x8x1xf32> -> vector<1x8x34xf32>
    "tpu.trace_start"() <{level = 10 : i32, message = "btk,bjk->btj"}> : () -> ()
    %cst_18 = arith.constant dense<0.000000e+00> : vector<1x16x8xf32>
    %31 = tpu.matmul %28, %30, %cst_18 {dimension_numbers = #tpu.dot_dimension_numbers<[2], [2], [1], [1], [0, 0, 0, 1, 1, 1], [0], [0]>} : vector<1x16x34xf32>, vector<1x8x34xf32>, vector<1x16x8xf32> -> vector<1x16x8xf32>
    "tpu.trace_stop"() : () -> ()
    %cst_19 = arith.constant dense<0xFF800000> : vector<1x16xf32>
    %32 = vector.multi_reduction <maximumf>, %31, %cst_19 [2] : vector<1x16x8xf32> to vector<1x16xf32>
    %33 = vector.shape_cast %32 : vector<1x16xf32> to vector<1x16x1xf32>
    %34 = vector.broadcast %33 : vector<1x16x1xf32> to vector<1x16x8xf32>
    %35 = arith.subf %31, %34 : vector<1x16x8xf32>
    %36 = math.exp %35 : vector<1x16x8xf32>
    %cst_20 = arith.constant dense<0.000000e+00> : vector<1x16xf32>
    %37 = vector.multi_reduction <add>, %36, %cst_20 [2] : vector<1x16x8xf32> to vector<1x16xf32>
    %38 = vector.shape_cast %37 : vector<1x16xf32> to vector<1x16x1xf32>
    %39 = vector.broadcast %38 : vector<1x16x1xf32> to vector<1x16x8xf32>
    %40 = arith.divf %36, %39 : vector<1x16x8xf32>
    "tpu.trace_start"() <{level = 10 : i32, message = "btj,bjd->btd"}> : () -> ()
    %cst_21 = arith.constant dense<0.000000e+00> : vector<1x16x32xf32>
    %41 = tpu.matmul %40, %1, %cst_21 {dimension_numbers = #tpu.dot_dimension_numbers<[2], [1], [1], [2], [0, 0, 0, 1, 1, 2], [0], [0]>} : vector<1x16x8xf32>, vector<1x8x32xf32>, vector<1x16x32xf32> -> vector<1x16x32xf32>
    "tpu.trace_stop"() : () -> ()
    %cst_22 = arith.constant dense<0xFF800000> : vector<1x1xf32>
    %42 = vector.multi_reduction <maximumf>, %33, %cst_22 [1] : vector<1x16x1xf32> to vector<1x1xf32>
    %43 = vector.shape_cast %42 : vector<1x1xf32> to vector<1x1x1xf32>
    %44 = vector.broadcast %43 : vector<1x1x1xf32> to vector<1x16x1xf32>
    %45 = arith.subf %33, %44 : vector<1x16x1xf32>
    %46 = math.exp %45 : vector<1x16x1xf32>
    %cst_23 = arith.constant dense<0.000000e+00> : vector<1x1xf32>
    %47 = vector.multi_reduction <add>, %46, %cst_23 [1] : vector<1x16x1xf32> to vector<1x1xf32>
    %48 = vector.shape_cast %47 : vector<1x1xf32> to vector<1x1x1xf32>
    %49 = vector.broadcast %48 : vector<1x1x1xf32> to vector<1x16x1xf32>
    %50 = arith.divf %46, %49 : vector<1x16x1xf32>
    %51 = vector.broadcast %50 : vector<1x16x1xf32> to vector<1x16x32xf32>
    %52 = arith.mulf %51, %0 : vector<1x16x32xf32>
    %cst_24 = arith.constant dense<0.000000e+00> : vector<1x32xf32>
    %53 = vector.multi_reduction <add>, %52, %cst_24 [1] : vector<1x16x32xf32> to vector<1x32xf32>
    %54 = vector.shape_cast %53 : vector<1x32xf32> to vector<1x1x32xf32>
    %cst_25 = arith.constant 1.000000e+00 : f32
    %55 = vector.broadcast %cst_25 : f32 to vector<1x16x1xf32>
    %56 = arith.subf %55, %2 : vector<1x16x1xf32>
    %57 = vector.broadcast %56 : vector<1x16x1xf32> to vector<1x16x32xf32>
    %58 = arith.mulf %0, %57 : vector<1x16x32xf32>
    %59 = vector.broadcast %56 : vector<1x16x1xf32> to vector<1x16x32xf32>
    %60 = arith.mulf %41, %59 : vector<1x16x32xf32>
    %61 = arith.mulf %58, %41 : vector<1x16x32xf32>
    %62 = vector.broadcast %54 : vector<1x1x32xf32> to vector<1x16x32xf32>
    %63 = arith.mulf %58, %62 : vector<1x16x32xf32>
    %c0_26 = arith.constant 0 : index
    %c0_27 = arith.constant 0 : index
    %64 = vector.load %arg7[%c0_26, %c0_27] : memref<1x32xf32, #tpu.memory_space<vmem>>, vector<1x32xf32>
    %65 = vector.shape_cast %58 : vector<1x16x32xf32> to vector<16x32xf32>
    %c0_28 = arith.constant 0 : index
    %c0_29 = arith.constant 0 : index
    %c0_30 = arith.constant 0 : index
    %66 = vector.load %arg6[%c0_28, %c0_29, %c0_30] : memref<4x32x32xf32, #tpu.memory_space<vmem>>, vector<1x32x32xf32>
    %67 = vector.shape_cast %66 : vector<1x32x32xf32> to vector<32x32xf32>
    %cst_31 = arith.constant dense<0.000000e+00> : vector<16x32xf32>
    %68 = tpu.matmul %65, %67, %cst_31 {dimension_numbers = #tpu.dot_dimension_numbers<[1], [0], [0], [1], [0, 0, 1, 1], [], []>} : vector<16x32xf32>, vector<32x32xf32>, vector<16x32xf32> -> vector<16x32xf32>
    %69 = vector.broadcast %64 : vector<1x32xf32> to vector<16x32xf32>
    %70 = arith.addf %69, %68 : vector<16x32xf32>
    %71 = vector.shape_cast %60 : vector<1x16x32xf32> to vector<16x32xf32>
    %c1 = arith.constant 1 : index
    %c0_32 = arith.constant 0 : index
    %c0_33 = arith.constant 0 : index
    %72 = vector.load %arg6[%c1, %c0_32, %c0_33] : memref<4x32x32xf32, #tpu.memory_space<vmem>>, vector<1x32x32xf32>
    %73 = vector.shape_cast %72 : vector<1x32x32xf32> to vector<32x32xf32>
    %cst_34 = arith.constant dense<0.000000e+00> : vector<16x32xf32>
    %74 = tpu.matmul %71, %73, %cst_34 {dimension_numbers = #tpu.dot_dimension_numbers<[1], [0], [0], [1], [0, 0, 1, 1], [], []>} : vector<16x32xf32>, vector<32x32xf32>, vector<16x32xf32> -> vector<16x32xf32>
    %75 = arith.addf %70, %74 : vector<16x32xf32>
    %76 = vector.shape_cast %61 : vector<1x16x32xf32> to vector<16x32xf32>
    %c2 = arith.constant 2 : index
    %c0_35 = arith.constant 0 : index
    %c0_36 = arith.constant 0 : index
    %77 = vector.load %arg6[%c2, %c0_35, %c0_36] : memref<4x32x32xf32, #tpu.memory_space<vmem>>, vector<1x32x32xf32>
    %78 = vector.shape_cast %77 : vector<1x32x32xf32> to vector<32x32xf32>
    %cst_37 = arith.constant dense<0.000000e+00> : vector<16x32xf32>
    %79 = tpu.matmul %76, %78, %cst_37 {dimension_numbers = #tpu.dot_dimension_numbers<[1], [0], [0], [1], [0, 0, 1, 1], [], []>} : vector<16x32xf32>, vector<32x32xf32>, vector<16x32xf32> -> vector<16x32xf32>
    %80 = arith.addf %75, %79 : vector<16x32xf32>
    %81 = vector.shape_cast %63 : vector<1x16x32xf32> to vector<16x32xf32>
    %c3 = arith.constant 3 : index
    %c0_38 = arith.constant 0 : index
    %c0_39 = arith.constant 0 : index
    %82 = vector.load %arg6[%c3, %c0_38, %c0_39] : memref<4x32x32xf32, #tpu.memory_space<vmem>>, vector<1x32x32xf32>
    %83 = vector.shape_cast %82 : vector<1x32x32xf32> to vector<32x32xf32>
    %cst_40 = arith.constant dense<0.000000e+00> : vector<16x32xf32>
    %84 = tpu.matmul %81, %83, %cst_40 {dimension_numbers = #tpu.dot_dimension_numbers<[1], [0], [0], [1], [0, 0, 1, 1], [], []>} : vector<16x32xf32>, vector<32x32xf32>, vector<16x32xf32> -> vector<16x32xf32>
    %85 = arith.addf %80, %84 : vector<16x32xf32>
    %cst_41 = arith.constant 0.000000e+00 : f32
    %86 = vector.broadcast %cst_41 : f32 to vector<16x32xf32>
    %87 = arith.maximumf %85, %86 : vector<16x32xf32>
    %88 = vector.shape_cast %87 : vector<16x32xf32> to vector<1x16x32xf32>
    %c0_42 = arith.constant 0 : index
    %c0_43 = arith.constant 0 : index
    %c0_44 = arith.constant 0 : index
    %89 = vector.load %arg8[%c0_42, %c0_43, %c0_44] : memref<1x16x32xf32, #tpu.memory_space<vmem>>, vector<1x16x32xf32>
    tpu.vector_store %arg8[%c0_42, %c0_43, %c0_44], %88 {strides = array<i32>} : memref<1x16x32xf32, #tpu.memory_space<vmem>>, vector<1x16x32xf32>,
    return
  }
  func.func @transform_0(%arg0: i32) -> (i32, i32, i32) {
    %c0_i32 = arith.constant 0 : i32
    %c0_i32_0 = arith.constant 0 : i32
    %c0_i32_1 = arith.constant 0 : i32
    return %arg0, %c0_i32, %c0_i32_0 : i32, i32, i32
  }
  func.func @transform_1(%arg0: i32) -> (i32, i32, i32) {
    %c0_i32 = arith.constant 0 : i32
    %c0_i32_0 = arith.constant 0 : i32
    %c0_i32_1 = arith.constant 0 : i32
    return %arg0, %c0_i32, %c0_i32_0 : i32, i32, i32
  }
  func.func @transform_2(%arg0: i32) -> (i32, i32, i32) {
    %c0_i32 = arith.constant 0 : i32
    %c0_i32_0 = arith.constant 0 : i32
    %c0_i32_1 = arith.constant 0 : i32
    return %arg0, %c0_i32, %c0_i32_0 : i32, i32, i32
  }
  func.func @transform_3(%arg0: i32) -> (i32, i32, i32) {
    %c0_i32 = arith.constant 0 : i32
    %c0_i32_0 = arith.constant 0 : i32
    %c0_i32_1 = arith.constant 0 : i32
    return %arg0, %c0_i32, %c0_i32_0 : i32, i32, i32
  }
  func.func @transform_4(%arg0: i32) -> (i32, i32) {
    %c0_i32 = arith.constant 0 : i32
    %c0_i32_0 = arith.constant 0 : i32
    %c0_i32_1 = arith.constant 0 : i32
    return %c0_i32, %c0_i32_0 : i32, i32
  }
  func.func @transform_5(%arg0: i32) -> (i32, i32, i32) {
    %c0_i32 = arith.constant 0 : i32
    %c0_i32_0 = arith.constant 0 : i32
    %c0_i32_1 = arith.constant 0 : i32
    %c0_i32_2 = arith.constant 0 : i32
    return %c0_i32, %c0_i32_0, %c0_i32_1 : i32, i32, i32
  }
  func.func @transform_6(%arg0: i32) -> (i32, i32) {
    %c0_i32 = arith.constant 0 : i32
    %c0_i32_0 = arith.constant 0 : i32
    %c0_i32_1 = arith.constant 0 : i32
    return %c0_i32, %c0_i32_0 : i32, i32
  }
  func.func @transform_7(%arg0: i32) -> (i32, i32, i32) {
    %c0_i32 = arith.constant 0 : i32
    %c0_i32_0 = arith.constant 0 : i32
    %c0_i32_1 = arith.constant 0 : i32
    return %arg0, %c0_i32, %c0_i32_0 : i32, i32, i32
  }
}

</mosaic_0001>

<bundles_post_ra>
// kernel: tpu_custom_call.1
= control target key start
LH: loop header
LB: loop body
LE: loop exit
PB: predicated region body
PF: predicated region fallthrough
CT: control target
= control target key end

     0   :  { %12 = vsyncpa [#allocation3], 0  ;;  %s1728_s0 = inlined_call_operand.vmem [shape: f32[2,16,32], index: 0, kind: input, shape index: {}]   ;;  %s1729_s1 = inlined_call_operand.vmem [shape: f32[2,8,32], index: 1, kind: input, shape index: {}]   ;;  %s1730_s2 = inlined_call_operand.vmem [shape: f32[2,16,1], index: 2, kind: input, shape index: {}]   ;;  %s1731_s3 = inlined_call_operand.vmem [shape: f32[2,8,1], index: 3, kind: input, shape index: {}]   ;;  %s1732_s4 = inlined_call_operand.vmem [shape: f32[3,32], index: 4, kind: input, shape index: {}]   ;;  %s1733_s5 = inlined_call_operand.hbm [shape: f32[4,32,32], index: 5, kind: input, shape index: {}]   ;;  %s1734_s6 = inlined_call_operand.vmem [shape: f32[1,32], index: 6, kind: input, shape index: {}]   ;;  %s1735_s7 = inlined_call_operand.hbm [shape: f32[2,16,32], index: 7, kind: output, shape index: {}]  }
   0x1   :  { %13 = vsyncpa [#allocation4], 0 }
   0x2   :  { %15 = vsyncpa [#allocation4 + $0x1], 0  ;;  %s1511_s24 = smov 0   ;;  %s1513_s25 = smov 0  }
   0x3   :  { %s1515_s26 = smov 0   ;;  %s1517_s27 = smov 0  }
   0x4 LB: > { %s1532_s28 = sadd.s32 4294967295, %s1460_s27   ;;  %s1134_s29 = sadd.s32 4294967294, %s1460_s27   ;;  %s1460_s27 = sphi %s1517_s27, %s1751_s27   ;;  %s1456_s26 = sphi %s1515_s26, %s1750_s26   ;;  %s1452_s25 = sphi %s1513_s25, %s1749_s25   ;;  %s1448_s24 = sphi %s1511_s24, %s1748_s24  }
   0x5   : > { %s1536_s30 = sadd.s32 1, %s1460_s27   ;;  %s195_s8 = sadd.s32 1, %s1456_s26 }
   0x6   : > { %s192_s9 = ssub.s32 %s1460_s27, %s1536_s30  ;;  %p205_p0 = scmp.ne.s32.totalorder %s1456_s26, %s1452_s25 }
   0x7   : > { %p193_p1 = scmp.eq.s32.totalorder %s192_s9, 0  ;;  %p206_p2 = scmp.eq.s32.totalorder %s1532_s28, 1 }
   0x8   : > { %p211_p3 = scmp.ne.s32.totalorder %s1452_s25, %s1448_s24  ;;  %p212_p4 = scmp.eq.s32.totalorder %s1134_s29, 1 }
   0x9   : > { %s1547_s10 = scalar_select %p193_p1, %s1456_s26, %s195_s8  }
   0xa   : > { %p1549_p5 = por %p206_p2, %p205_p0  ;;  %p1553_p6 = por %p212_p4, %p211_p3 }
   0xb   : > { %p1135_p7 = scmp.ge.s32.totalorder %s1460_s27, 1  ;;  %p219_p8 = scmp.lt.s32.totalorder %s1460_s27, 3 }
   0xc   : > { %s1739_s11 = scalar_select %p1549_p5, 1, 0 }
   0xd   : > { %s1740_s12 = scalar_select %p1553_p6, 1, 0 }
   0xe   : > { %p1736_p9 = scmp.eq.s32.totalorder %s1532_s28, 0  ;;  %p1560_p10 = pnand %p1135_p7, %p219_p8 }
   0xf   : > { %s1462_s14 = smov [#allocation2]   ;;  %s1366_s19 = scalar_lea.hbm %s1733_s5, 2048 }
  0x10   : > { %s1741_s13 = scalar_select %p1560_p10, 1, 0 }
  0x11   : > { %s234_s15 = sshll.u32 %s1462_s14, 4  ;;  %p1299_p11 = pneg %p1560_p10  ;;  %s235_s15 = int_to_ptr.vmem [resolvable:$true] %s234_s15 }
  0x12   : > { %p1367_p13 = scmp.ne.s32.totalorder %s1733_s5, %s1366_s19  ;;  %p1373_p3 = scmp.lt.u32.totalorder %s1366_s19, %s1733_s5 }
  0x13   : > { %p1568_p12 = pnand %p1736_p9, %p1299_p11 }
  0x15   : > { %p1368_p0 = pneg %p1568_p12 }
  0x17   : > { %p1369_p1 = pnand %p1368_p0, %p1367_p13 }
  0x19   : > { %p1370_p2 = pneg %p1369_p1 }
  0x1b   : > { %p1375_p4 = pnand %p1373_p3, %p1370_p2 }
  0x1d   : > { %1378 = shalt.err (!%p1375_p4)
}
  0x1e   : > { %s1379_s29 = scalar_lea.vmem %s235_s15, 2048  ;;  %p1387_p9 = scmp.lt.s32.totalorder %s235_s15, %s235_s15 }
  0x1f   : > { %p1380_p7 = scmp.ne.s32.totalorder %s235_s15, %s1379_s29  ;;  %p1388_p6 = scmp.lt.s32.totalorder %s1379_s29, %s1379_s29 }
  0x21   : > { %p1382_p8 = pnand %p1380_p7, %p1368_p0  ;;  %p1389_p5 = por %p1388_p6, %p1387_p9 }
  0x23   : > { %p1383_p11 = pneg %p1382_p8 }
  0x25   : > { %p1390_p10 = pnand %p1389_p5, %p1383_p11 }
  0x27   : > { %1393 = shalt.err (!%p1390_p10)
}
  0x28   : > { %s1463_s8 = smov 128   ;;  %s1464_s9 = smov 8  }
  0x29   : > { %1302 = dma.hbm_to_vmem [thread:$0]  (!%p1568_p12), %s1733_s5, 2048, %s235_s15, [#allocation3], %s1463_s8, %s1463_s8, %s1464_s9  }
  0x2a   : > { %p1743_p13 = scmp.ne.s32.totalorder %s1741_s13, 0 }
  0x2b   : > { %p1744_p1 = scmp.eq.s32.totalorder (!%p1743_p13), %s1532_s28, 0 }
  0x2c   : > { %283 = sbr.rel (%p1743_p13) target bundleno = 1313 (0x521), region = 48 }
  0x33   : > { %1439 = dma.done.wait (%p1744_p1), [#allocation3], 2048   ;;  %p1745_p0 = pmov %p1744_p1 }
  0x34   : > { %p328_p5 = scmp.lt.s32.totalorder %s1532_s28, 1  ;;  %v352_v0 = vlaneseq  ;;  %v351_v5 = vld [vmem:[%s1732_s4] sm:$0x7]  ;;  %vm358_vm0 = vcmask 261120   ;;  %s1466_s21 = smov 32   ;;  %vm396_vm1 = vcmask 269312  }
  0x35   : > { %1441 = vsyncadd (%p1745_p0), [#allocation3], 4294965248  ;;  %vm405_vm2 = vcmask 277504   ;;  %vm490_vm3 = vcmask 64512   ;;  %v1467_v45 = vmov 0   ;;  %v649_v58 = vld [vmem:[#allocation2] sm:$0xff] }
  0x36   : > { %s329_s18 = scalar_select %p328_p5, %s1532_s28, 1  ;;  %v353_v1 = vshrl.u32 %v352_v0, 7  ;;  %1351 = vset.pattern.permute.xlu1 %v1467_v45  ;;  %1350 = vset.pattern.permute.xlu0 %v1467_v45  ;;  %v650_v59 = vld [vmem:[#allocation2 + $0x8] sm:$0xff]  ;;  %v651_v60 = vld [vmem:[#allocation2 + $0x10] sm:$0xff]  ;;  %v652_v62 = vld [vmem:[#allocation2 + $0x18] sm:$0xff] }
  0x37   : > { %v1253_v61 = vpack.c.bf16 %v650_v59, %v649_v58  ;;  %v831_v63 = vld [vmem:[#allocation2 + $0x40] sm:$0xff]  ;;  %v832_v0 = vld [vmem:[#allocation2 + $0x48] sm:$0xff]  ;;  %s1168_s9 = sshll.u32 %s1532_s28, 8  ;;  %p1746_p9 = scmp.ne.s32.totalorder %s1739_s11, 0 }
  0x38   : > { %s1143_s16 = sshll.u32 %s329_s18, 3  ;;  %v377_v2 = vsub.s32 1, %v353_v1  ;;  %s1166_s19 = sshll.u32 %s329_s18, 4  ;;  %v354_v3 = vsub.s32 0, %v353_v1  ;;  %v371_v28 = vsub.s32 2, %v353_v1  ;;  %v1257_v1 = vpack.c.bf16 %v652_v62, %v651_v60  ;;  %v922_v62 = vld [vmem:[#allocation2 + $0x78] sm:$0xff] }
  0x39   : > { %s336_s13 = scalar_lea.vmem %s1729_s1, %s1143_s16  ;;  %s332_s23 = scalar_lea.vmem %s1728_s0, %s1166_s19 }
  0x3a   : > { %v348_v4 = vld [vmem:[%s336_s13] sm:$0xff]  ;;  %v378_v7 = vrot.slane %v351_v5, %v377_v2  ;;  %v355_v8 = vrot.slane %v351_v5, %v354_v3  ;;  %v1607_v9 = vld [vmem:[%s332_s23 + $0x8] sm:$0xff]  ;;  %s345_s17 = scalar_lea.vmem %s1731_s3, %s1143_s16  ;;  %s341_s20 = scalar_lea.vmem %s1730_s2, %s1166_s19  ;;  %v372_v29 = vrot.slane %v351_v5, %v371_v28  ;;  %v1269_v2 = vpack.c.bf16 %v832_v0, %v831_v63 }
  0x3b   : > { %v1605_v6 = vld [vmem:[%s332_s23] sm:$0xff]  ;;  %1204 = vmatprep.subr.mxu1 %v348_v4  ;;  %v350_v17 = vld [vmem:[%s341_s20 + $0x8] sm:$0xff]  ;;  %s1465_s13 = smov 33   ;;  %v403_v30 = vsel %vm358_vm0, %v348_v4, 1.0  ;;  %s325_s16 = sand.u32 1, %s1452_s25  }
  0x3c   : > { %1205 = vmatpush3.msra.mxu1 %v348_v4  ;;  %v379_v10 = vmul.f32 %v378_v7, %v348_v4  ;;  %v356_v11 = vmul.f32 %v355_v8, %v1605_v6  ;;  %v357_v12 = vmul.f32 %v355_v8, %v1607_v9  ;;  %v383_v16 = vld [vmem:[%s345_s17] sm:$0xff]  ;;  %v366_v20 = vmul.f32 -1e+10, %v350_v17  ;;  %v744_v4 = vld [vmem:[#allocation2 + $0x28] sm:$0xff]  ;;  %s1140_s19 = sshll.u32 %s325_s16, 4  ;;  %s1681_s18 = scalar_lea.hbm %s1735_s7, %s1168_s9 }
  0x3d   : > { %v384_v18 = vmul.f32 -1e+10, %v383_v16  ;;  %v349_v19 = vld [vmem:[%s341_s20] sm:$0xff]  ;;  %v374_v33 = vmul.f32 %v372_v29, %v1607_v9  ;;  %v373_v34 = vmul.f32 %v372_v29, %v1605_v6  ;;  %v629_v56 = vsub.f32 1.0, %v350_v17  ;;  %1270 = vmatprep.subr.bf16.mxu1 %v1269_v2  ;;  %s327_s29 = scalar_lea.vmem [#allocation5], %s1140_s19  ;;  %s1687_s28 = scalar_lea.sflag [#allocation4], %s325_s16 }
  0x3e   : > { %v380_v13 = vsel %vm358_vm0, %v379_v10, 0.0  ;;  %v362_v14 = vsel %vm358_vm0, %v357_v12, 0.0  ;;  %v359_v15 = vsel %vm358_vm0, %v356_v11, 0.0  ;;  %v365_v24 = vmul.f32 -1e+10, %v349_v19  ;;  %v743_v3 = vld [vmem:[#allocation2 + $0x20] sm:$0xff] }
  0x3f   : > { %381 = vadd.xlane.f32.xlu0 %v380_v13  ;;  %363 = vadd.xlane.f32.xlu1 %v362_v14  ;;  %v628_v57 = vsub.f32 1.0, %v349_v19  ;;  %v1261_v5 = vpack.c.bf16 %v744_v4, %v743_v3  ;;  %v834_v19 = vld [vmem:[#allocation2 + $0x58] sm:$0xff]  ;;  %s1024_s8 = sshll.u32 %s327_s29, 4  ;;  %s1468_s20 = smov [#allocation5]   ;;  %s1683_s8 = int_to_ptr.vmem [resolvable:$true] %s1024_s8 }
  0x40   : > { %s1394_s15 = scalar_lea.vmem %s1683_s8, 256 }
  0x41   : > { %p1395_p6 = scmp.ne.s32.totalorder %s1683_s8, %s1394_s15 }
  0x43   : > { %360 = vadd.xlane.f32.xlu0 %v359_v15  ;;  %p1396_p10 = pnand %p1395_p6, %p1746_p9 }
  0x45   : > { %p1397_p12 = pneg %p1396_p10 }
  0xcc   : > { %v382_v21 = vpop.xlane.xlu0 %381  ;;  %v364_v22 = vpop.xlane.xlu1 %363 }
  0xcd   : > { %v385_v23 = vadd.f32 %v384_v18, %v382_v21  ;;  %v368_v25 = vadd.f32 %v366_v20, %v364_v22  ;;  %v833_v18 = vld [vmem:[#allocation2 + $0x50] sm:$0xff]  ;;  %v746_v22 = vld [vmem:[#allocation2 + $0x38] sm:$0xff] }
  0xce   : > { %v745_v20 = vld [vmem:[#allocation2 + $0x30] sm:$0xff]  ;;  %v1273_v21 = vpack.c.bf16 %v834_v19, %v833_v18 }
  0xcf   : > { %400 = vrot.lane.b32.xlu1 %v385_v23, %s1465_s13  ;;  %v1265_v23 = vpack.c.bf16 %v746_v22, %v745_v20  ;;  %s1398_s13 = sshll.u32 %s1468_s20, 4  ;;  %s1399_s13 = int_to_ptr.vmem [resolvable:$false] %s1398_s13 }
  0xd0   : > { %v361_v26 = vpop.xlane.xlu0 %360  ;;  %p1401_p2 = scmp.lt.s32.totalorder %s1683_s8, %s1399_s13 }
  0xd1   : > { %v367_v27 = vadd.f32 %v365_v24, %v361_v26  ;;  %v919_v24 = vld [vmem:[#allocation2 + $0x60] sm:$0xff] }
  0xd3   : > { %388 = vrot.lane.b32.xlu0 %v367_v27, %s1466_s21  ;;  %390 = vrot.lane.b32.xlu1 %v368_v25, %s1466_s21  ;;  %v920_v25 = vld [vmem:[#allocation2 + $0x68] sm:$0xff]  ;;  %s1400_s21 = scalar_lea.vmem %s1399_s13, 512 }
  0xd4   : > { %v1277_v27 = vpack.c.bf16 %v920_v25, %v919_v24  ;;  %p1402_p3 = scmp.lt.s32.totalorder %s1400_s21, %s1394_s15 }
  0xd6   : > { %p1403_p4 = por %p1402_p3, %p1401_p2 }
  0xd8   : > { %p1404_p7 = pnand %p1403_p4, %p1397_p12 }
 0x141   : > { %v401_v31 = vpop.permute.xlu1 %400 }
 0x142   : > { %v404_v32 = vsel %vm396_vm1, %v403_v30, %v401_v31 }
 0x143   : > { %1199 = vmatprep.subr.msk.mxu0 %vm405_vm2, %v404_v32 }
 0x144   : > { %1200 = vmatpush3.xpose.msk.msra.mxu0 %vm405_vm2, %v404_v32 }
 0x145   : > { %v389_v35 = vpop.permute.xlu0 %388  ;;  %v391_v36 = vpop.permute.xlu1 %390  ;;  %1254 = vmatprep.subr.bf16.mxu0 %v1253_v61 }
 0x146   : > { %v395_v37 = vsel %vm358_vm0, %v374_v33, %v391_v36  ;;  %v394_v38 = vsel %vm358_vm0, %v373_v34, %v389_v35 }
 0x147   : > { %v398_v39 = vsel %vm396_vm1, %v395_v37, 1.0  ;;  %v397_v40 = vsel %vm396_vm1, %v394_v38, 1.0 }
 0x148   : > { %1201 = vmatprep.mubr.msk.f32.mxu0 %vm405_vm2, %v397_v40 }
 0x149   : > { %1202 = vmatmul.mubr.msk.f32.vlgmr.msra.gmra.mrb[0].mxu0 %vm405_vm2, %v398_v39 }
 0x14a   : > { %1256 = vmatpush3.bf16.msra.mxu0 %v1253_v61  ;;  %v921_v61 = vld [vmem:[#allocation2 + $0x70] sm:$0xff] }
 0x14b   : > { %1258 = vmatprep.subr.bf16.mxu0 %v1257_v1  ;;  %v1281_v3 = vpack.c.bf16 %v922_v62, %v921_v61 }
 0x14e   : > { %1260 = vmatpush3.bf16.msra.mxu0 %v1257_v1 }
 0x14f   : > { %1262 = vmatprep.subr.bf16.mxu0 %v1261_v5 }
 0x21c   : > { %v1203_v41 = vpop.f32.mrb[0].mxu0 }
 0x21d   : > { %v481_v42 = vpop.f32.mrb[1].mxu0  ;;  %v494_v43 = vsel %vm490_vm3, %v1203_v41, -inf }
 0x21e   : > { %495 = vmax.xlane.f32.xlu0 %v494_v43  ;;  %v491_v44 = vsel %vm490_vm3, %v481_v42, -inf }
 0x21f   : > { %492 = vmax.xlane.f32.xlu1 %v491_v44 }
 0x2ab   : > { %v1627_v46 = vpop.xlane.xlu0 %495 }
 0x2ac   : > { %v498_v47 = vsub.f32 %v1203_v41, %v1627_v46  ;;  %v1630_v48 = vpop.xlane.xlu1 %492 }
 0x2ad   : > { %v497_v49 = vsub.f32 %v481_v42, %v1630_v48  ;;  %v594_v26 = vmax.f32 %v1630_v48, %v1627_v46 }
 0x2ae   : > { %v501_v50 = vmul.f32 1.442695, %v498_v47 }
 0x2af   : > { %v499_v51 = vmul.f32 1.442695, %v497_v49  ;;  %v595_v28 = vrot.slane %v594_v26, 4 }
 0x2b0   : > { %1352 = vpow2.f32 %v501_v50 }
 0x2b1   : > { %1354 = vpow2.f32 %v499_v51  ;;  %v596_v29 = vmax.f32 %v594_v26, %v595_v28 }
 0x2b3   : > { %v597_v30 = vrot.slane %v596_v29, 2 }
 0x2b5   : > { %v598_v31 = vmax.f32 %v596_v29, %v597_v30 }
 0x2b7   : > { %v599_v32 = vrot.slane %v598_v31, 1 }
 0x2b9   : > { %v600_v33 = vmax.f32 %v598_v31, %v599_v32 }
 0x2ba   : > { %v1353_v52 = vpop.eup %1352 }
 0x2bb   : > { %v1355_v53 = vpop.eup %1354  ;;  %v506_v54 = vsel %vm490_vm3, %v1353_v52, 0.0  ;;  %v601_v34 = vsub.f32 %v1630_v48, %v600_v33  ;;  %v602_v35 = vsub.f32 %v1627_v46, %v600_v33 }
 0x2bc   : > { %507 = vadd.xlane.f32.xlu1 %v506_v54  ;;  %v503_v55 = vsel %vm490_vm3, %v1355_v53, 0.0 }
 0x2bd   : > { %504 = vadd.xlane.f32.xlu0 %v503_v55  ;;  %v603_v36 = vmul.f32 1.442695, %v601_v34  ;;  %v605_v37 = vmul.f32 1.442695, %v602_v35 }
 0x2cd   : > { %637 = vperm.xlu1 %1351, %v629_v56  }
 0x2d3   : > { %632 = vperm.xlu0 %1350, %v628_v57  }
 0x349   : > { %v508_v7 = vpop.xlane.xlu1 %507 }
 0x34a   : > { %1356 = vrcp.f32 %v508_v7  ;;  %v505_v8 = vpop.xlane.xlu0 %504 }
 0x34b   : > { %1358 = vrcp.f32 %v505_v8 }
 0x34c   : > { %1360 = vpow2.f32 %v603_v36 }
 0x34d   : > { %v1635_v10 = vpop.permute.xlu1 %637  ;;  %1362 = vpow2.f32 %v605_v37 }
 0x34e   : > { %v1645_v14 = vmul.f32 %v1635_v10, %v1607_v9 }
 0x352   : > { %v1637_v11 = vpop.permute.xlu0 %632 }
 0x353   : > { %v1641_v12 = vmul.f32 %v1637_v11, %v1605_v6 }
 0x354   : > { %v1357_v13 = vpop.eup %1356 }
 0x355   : > { %v1359_v15 = vpop.eup %1358  ;;  %1217 = vmatprep.mubr.msk.f32.mxu0 %vm358_vm0, %v1641_v12  ;;  %v512_v17 = vmul.f32 %v1357_v13, %v1353_v52 }
 0x356   : > { %v510_v16 = vmul.f32 %v1359_v15, %v1355_v53  ;;  %1218 = vmatmul.mubr.msk.f32.vlgmr.msra.gmra.mrb[2].mxu0 %vm358_vm0, %v1645_v14  ;;  %v1361_v38 = vpop.eup %1360 }
 0x357   : > { %1264 = vmatpush3.bf16.msra.mxu0 %v1261_v5  ;;  %v1363_v39 = vpop.eup %1362 }
 0x358   : > { %1206 = vmatprep.mubr.msk.f32.mxu1 %vm490_vm3, %v510_v16  ;;  %1266 = vmatprep.subr.bf16.mxu0 %v1265_v23  ;;  %v607_v40 = vadd.f32 %v1363_v39, %v1361_v38 }
 0x359   : > { %1207 = vmatmul.mubr.msk.f32.vlgmr.msra.gmra.mrb[0].mxu1 %vm490_vm3, %v512_v17 }
 0x35a   : > { %1272 = vmatpush3.bf16.msra.mxu1 %v1269_v2  ;;  %v608_v41 = vrot.slane %v607_v40, 4 }
 0x35b   : > { %1274 = vmatprep.subr.bf16.mxu1 %v1273_v21  ;;  %1268 = vmatpush3.bf16.msra.mxu0 %v1265_v23 }
 0x35c   : > { %v609_v42 = vadd.f32 %v608_v41, %v607_v40 }
 0x35e   : > { %1276 = vmatpush3.bf16.msra.mxu1 %v1273_v21  ;;  %v610_v43 = vrot.slane %v609_v42, 2 }
 0x35f   : > { %1278 = vmatprep.subr.bf16.mxu1 %v1277_v27 }
 0x360   : > { %v611_v44 = vadd.f32 %v610_v43, %v609_v42 }
 0x362   : > { %v612_v45 = vrot.slane %v611_v44, 1 }
 0x364   : > { %v613_v47 = vadd.f32 %v612_v45, %v611_v44 }
 0x366   : > { %1364 = vrcp.f32 %v613_v47 }
 0x370   : > { %v1365_v49 = vpop.eup %1364 }
 0x371   : > { %v615_v50 = vmul.f32 %v1365_v49, %v1361_v38  ;;  %v616_v51 = vmul.f32 %v1365_v49, %v1363_v39 }
 0x373   : > { %v617_v48 = vmul.f32 %v615_v50, %v1605_v6  ;;  %v618_v46 = vmul.f32 %v616_v51, %v1607_v9 }
 0x375   : > { %v619_v52 = vsel %vm358_vm0, %v617_v48, 0.0  ;;  %v620_v53 = vsel %vm358_vm0, %v618_v46, 0.0 }
 0x376   : > { %v621_v54 = vadd.f32 %v620_v53, %v619_v52 }
 0x378   : > { %v622_v55 = vrot.slane %v621_v54, 4 }
 0x37a   : > { %v623_v56 = vadd.f32 %v622_v55, %v621_v54 }
 0x37c   : > { %v624_v57 = vrot.slane %v623_v56, 2 }
 0x37e   : > { %v625_v58 = vadd.f32 %v624_v57, %v623_v56 }
 0x380   : > { %v626_v59 = vrot.slane %v625_v58, 1 }
 0x382   : > { %v627_v0 = vadd.f32 %v626_v59, %v625_v58 }
 0x384   : > { %v646_v4 = vmul.f32 %v1641_v12, %v627_v0  ;;  %v647_v5 = vmul.f32 %v1645_v14, %v627_v0 }
 0x42c   : > { %v1208_v60 = vpop.f32.mrb[0].mxu1 }
 0x42d   : > { %v585_v63 = vpop.f32.mrb[1].mxu1  ;;  %v643_v9 = vmul.f32 %v1208_v60, %v1635_v10  ;;  %v645_v2 = vmul.f32 %v1208_v60, %v1645_v14  ;;  %v1154_v10 = vld [vmem:[%s1734_s6] ss:$0 sm:$0xff] }
 0x42e   : > { %v642_v1 = vmul.f32 %v1637_v11, %v585_v63  ;;  %v644_v6 = vmul.f32 %v1641_v12, %v585_v63 }
 0x430   : > { %1228 = vmatprep.mubr.msk.f32.mxu0 %vm358_vm0, %v642_v1  ;;  %1239 = vmatprep.mubr.msk.f32.mxu1 %vm358_vm0, %v644_v6 }
 0x431   : > { %1229 = vmatmul.mubr.msk.f32.vlgmr.msra.gmra.mrb[2].mxu0 %vm358_vm0, %v643_v9  ;;  %1240 = vmatmul.mubr.msk.f32.vlgmr.msra.gmra.mrb[2].mxu1 %vm358_vm0, %v645_v2 }
 0x432   : > { %1280 = vmatpush3.bf16.msra.mxu1 %v1277_v27  ;;  %1250 = vmatprep.mubr.msk.f32.mxu1 %vm358_vm0, %v646_v4 }
 0x433   : > { %1282 = vmatprep.subr.bf16.mxu1 %v1281_v3 }
 0x436   : > { %1284 = vmatpush3.bf16.msra.mxu1 %v1281_v3 }
 0x439   : > { %1251 = vmatmul.mubr.msk.f32.vlgmr.msra.gmra.mrb[2].mxu1 %vm358_vm0, %v647_v5 }
 0x504   : > { %v1230_v7 = vpop.f32.mrb[2].mxu0 }
 0x505   : > { %v819_v8 = vpop.f32.mrb[3].mxu0  ;;  %v1285_v11 = vadd.f32 %v1230_v7, %v1154_v10 }
 0x506   : > { %v1287_v12 = vadd.f32 %v1154_v10, %v819_v8 }
 0x50c   : > { %v1252_v13 = vpop.f32.mrb[2].mxu1 }
 0x50d   : > { %v1286_v15 = vadd.f32 %v1285_v11, %v1252_v13  ;;  %v995_v16 = vpop.f32.mrb[3].mxu1 }
 0x50e   : > { %v1288_v14 = vadd.f32 %v1287_v12, %v995_v16 }
 0x50f   : > { %v1007_v17 = vmax.f32 %v1286_v15, 0.0 }
 0x510   : > { %v1006_v18 = vmax.f32 %v1288_v14, 0.0 }
 0x511   : > { %1009 = vst.msk [vmem:[%s327_s29 + $0x8] sm:$0xff] %vm358_vm0, %v1007_v17 }
 0x512   : > { %1008 = vst.msk [vmem:[%s327_s29] sm:$0xff] %vm358_vm0, %v1006_v18 }
 0x513   : > { %1407 = shalt.err (!%p1404_p7)
}
 0x514   : > { %s1408_s16 = scalar_lea.hbm %s1681_s18, 256  ;;  %s1412_s23 = scalar_lea.hbm %s1735_s7, 512 }
 0x515   : > { %p1409_p8 = scmp.ne.s32.totalorder %s1681_s18, %s1408_s16  ;;  %p1413_p1 = scmp.lt.u32.totalorder %s1681_s18, %s1735_s7 }
 0x516   : > { %p1414_p0 = scmp.lt.u32.totalorder %s1412_s23, %s1408_s16  ;;  %p1416_p6 = scmp.lt.u32.totalorder %s1408_s16, %s1681_s18 }
 0x517   : > { %p1410_p11 = pnand %p1409_p8, %p1746_p9 }
 0x518   : > { %p1415_p5 = por %p1414_p0, %p1413_p1 }
 0x519   : > { %p1411_p13 = pneg %p1410_p11 }
 0x51a   : > { %p1417_p10 = por %p1416_p6, %p1415_p5 }
 0x51c   : > { %p1418_p12 = pnand %p1417_p10, %p1411_p13 }
 0x51e   : > { %1421 = shalt.err (!%p1418_p12)
}
 0x51f   : > { %s1469_s14 = smov 128   ;;  %s1470_s17 = smov 8  }
 0x520   : > { %1297 = dma.vmem_to_hbm [thread:$0]  (%p1746_p9), %s1683_s8, 256, %s1681_s18, %s1687_s28, %s1469_s14, %s1469_s14, %s1470_s17  }
 0x521 PF: > { %p1309_p2 = scmp.ge.s32.totalorder %s1460_s27, 2  ;;  %s1039_s15 = sand.u32 1, %s1448_s24  }
 0x522   : > { %p1747_p3 = scmp.ne.s32.totalorder %s1740_s12, 0  ;;  %s1040_s20 = scalar_lea.sflag [#allocation4], %s1039_s15 }
 0x524   : > { %p1304_p4 = pnand %p1309_p2, %p1747_p3 }
 0x526   : > { %1443 = dma.done.wait (!%p1304_p4), %s1040_s20, 256  }
 0x527   : > { %1445 = vsyncadd (!%p1304_p4), %s1040_s20, 4294967040  ;;  %p18_p7 = scmp.ge.s32.totalorder %s1536_s30, 4   ;;  %s1748_s24 = smov %s1452_s25 }
 0x528   : > { %s1749_s25 = smov %s1456_s26  ;;  %s1750_s26 = smov %s1547_s10 }
 0x529   : > { %s1751_s27 = smov %s1536_s30  ;;  %20 = sbr.rel (!%p18_p7) target bundleno = 4 (0x4), region = 100 }
 0x530   :  { %1045 = vsyncpa [#allocation3], 1 }
 0x531   :  { %1047 = vsyncpa [#allocation3 + $0x1], 1 }
 0x532   :  { %1048 = vsyncpa [#allocation4], 1 }
 0x533   :  { %1050 = vsyncpa [#allocation4 + $0x1], 1 }

</bundles_post_ra>
